<compile_context>
chip_gen: v7x
topology: tpu7x:2x2x1
jax: 0.10.0
libtpu: 0.0.40
codegen_flags: <defaults>
</compile_context>

<pallas_src>
import jax
import jax.numpy as jnp
from jax.experimental import pallas as pl
from jax.experimental.pallas import tpu as pltpu

LANE = 128  # TPU lane width; logits are padded to this.


def mlp_kernel(x_ref, w1_ref, b1_ref, w2_ref, b2_ref, w3_ref, b3_ref, o_ref):
    # x arrives as f32; cast to bf16 in VMEM right before the MXU (cheap VPU op).
    x = x_ref[...].astype(jnp.bfloat16)
    # fc1 + relu (bf16 MXU inputs, f32 accumulation, f32 bias)
    h1 = jnp.dot(x, w1_ref[...], preferred_element_type=jnp.float32)
    h1 = jnp.maximum(h1 + b1_ref[...], 0.0)
    # (dropout == identity in eval mode)
    # fc2 + relu
    h2 = jnp.dot(h1.astype(jnp.bfloat16), w2_ref[...],
                 preferred_element_type=jnp.float32)
    h2 = jnp.maximum(h2 + b2_ref[...], 0.0)
    # fc3 (logits, no activation) -- lane-padded to 128 columns
    out = jnp.dot(h2.astype(jnp.bfloat16), w3_ref[...],
                  preferred_element_type=jnp.float32) + b3_ref[...]
    o_ref[...] = out.astype(o_ref.dtype)


def _round_up(x, m):
    return ((x + m - 1) // m) * m


def _choose_tb(B, D, H1, H2):
    """Batch-tile rows per grid step.

    Budget ~24 MiB of VMEM for the streamed, double-buffered x/out tiles plus
    the f32 intermediates; weights (single-buffered bf16) are subtracted.
    Cap at 1024 rows and at ~B/2 so large batches always give >= 2 grid steps
    (v7x: two TensorCores share the 'parallel' batch axis)."""
    budget = 24 * 1024 * 1024
    weight_bytes = (D * H1 + H1 * H2 + H2 * LANE) * 2 + (H1 + H2 + LANE) * 4
    per_row = 2 * D * 4 + 2 * LANE * 4 + (H1 + H2) * 4
    tb_vmem = max(16, (budget - weight_bytes) // per_row)
    tb = min(tb_vmem, 1024, _round_up(pl.cdiv(B, 2), 16))
    tb = max(16, (tb // 16) * 16)          # multiple of 16 (bf16 sublane pack)
    tb = min(tb, _round_up(B, 8))          # never larger than the batch
    return tb


def prepare_params(params):
    """One-time parameter preparation (hoisted out of the per-call path):
    bf16 weight casts + zero-padding of the logits head to 128 lanes."""
    H2, NC = params["w3"].shape
    w3 = jnp.zeros((H2, LANE), jnp.bfloat16).at[:, :NC].set(
        params["w3"].astype(jnp.bfloat16))
    b3 = jnp.zeros((1, LANE), jnp.float32).at[:, :NC].set(
        params["b3"].reshape(1, -1).astype(jnp.float32))
    return {
        "w1": params["w1"].astype(jnp.bfloat16),
        "b1": params["b1"].reshape(1, -1).astype(jnp.float32),
        "w2": params["w2"].astype(jnp.bfloat16),
        "b2": params["b2"].reshape(1, -1).astype(jnp.float32),
        "w3": w3,
        "b3": b3,
        "num_classes": NC,
    }


def mlp_forward(x_nchw, prep):
    """x_nchw: (B, C, H, W) float32. prep: output of prepare_params()."""
    B = x_nchw.shape[0]
    # Same flattening order as torch .view(B, -1); stays f32 (kernel casts).
    x = x_nchw.reshape(B, -1)
    D = x.shape[1]

    w1, b1 = prep["w1"], prep["b1"]
    w2, b2 = prep["w2"], prep["b2"]
    w3, b3 = prep["w3"], prep["b3"]
    NC = prep["num_classes"]
    H1 = w1.shape[1]
    H2 = w2.shape[1]

    TB = _choose_tb(B, D, H1, H2)
    num_tiles = pl.cdiv(B, TB)

    # Cost hint for XLA's scheduler: three matmuls; f32 x read, bf16 weights,
    # f32 biases and f32 lane-padded logits writeback (no pre-passes anymore).
    flops = 2 * B * (D * H1 + H1 * H2 + H2 * LANE)
    bytes_accessed = (
        x.size * 4
        + (w1.size + w2.size + w3.size) * 2
        + (b1.size + b2.size + b3.size) * 4
        + B * LANE * 4)
    cost = pl.CostEstimate(flops=flops, transcendentals=0,
                           bytes_accessed=bytes_accessed)

    # Weights/biases: constant index_map -> VMEM-resident; single-buffered.
    resident = lambda shape: pl.BlockSpec(shape, lambda i: (0, 0),
                                          pipeline_mode=pl.Buffered(1))

    out = pl.pallas_call(
        mlp_kernel,
        out_shape=jax.ShapeDtypeStruct((B, LANE), jnp.float32),
        grid=(num_tiles,),
        in_specs=[
            pl.BlockSpec((TB, D), lambda i: (i, 0)),   # x: streamed per tile
            resident((D, H1)),
            resident((1, H1)),
            resident((H1, H2)),
            resident((1, H2)),
            resident((H2, LANE)),
            resident((1, LANE)),
        ],
        out_specs=pl.BlockSpec((TB, LANE), lambda i: (i, 0)),
        compiler_params=pltpu.CompilerParams(
            dimension_semantics=("parallel",),
            vmem_limit_bytes=32 * 1024 * 1024),
        cost_estimate=cost,
    )(x, w1, b1, w2, b2, w3, b3)

    # Strip the lane padding of the logits (ragged batch rows, if any, are
    # already masked out of the store / never requested here).
    return out[:B, :NC]


def init_params(key, input_dim, num_classes=10):
    """Deterministic init mimicking PyTorch nn.Linear default (U(-1/sqrt(fan_in), +))."""
    def linear(key, fan_in, fan_out):
        kw, kb = jax.random.split(key)
        bound = 1.0 / jnp.sqrt(fan_in)
        # store weight as (fan_in, fan_out) so kernel does x @ W (== x @ W_torch.T)
        w = jax.random.uniform(kw, (fan_in, fan_out), jnp.float32, -bound, bound)
        b = jax.random.uniform(kb, (1, fan_out), jnp.float32, -bound, bound)
        return w, b

    k1, k2, k3 = jax.random.split(key, 3)
    w1, b1 = linear(k1, input_dim, 512)
    w2, b2 = linear(k2, 512, 256)
    w3, b3 = linear(k3, 256, num_classes)
    return {"w1": w1, "b1": b1, "w2": w2, "b2": b2, "w3": w3, "b3": b3}


if __name__ == "__main__":
    # Small shapes consistent with the module: MLP(num_classes=10,
    # input_channels=3, input_size=16) -> input_dim = 3*16*16 = 768.
    B, C, S, NUM_CLASSES = 8, 3, 16, 10
    input_dim = C * S * S

    key = jax.random.PRNGKey(0)
    kx, kp = jax.random.split(key)
    x = jax.random.normal(kx, (B, C, S, S), dtype=jnp.float32)
    params = init_params(kp, input_dim, NUM_CLASSES)

    prep = prepare_params(params)       # one-time weight prep (cast + pad)
    out = mlp_forward(x, prep)
    out = jax.block_until_ready(out)

    # Sanity check against a plain-JAX reference that uses the same bf16
    # weight/activation casts and f32 accumulation as the kernel.
    xf = x.reshape(B, -1).astype(jnp.bfloat16)
    w1b = params["w1"].astype(jnp.bfloat16)
    w2b = params["w2"].astype(jnp.bfloat16)
    w3b = params["w3"].astype(jnp.bfloat16)
    ref = jnp.dot(xf, w1b, preferred_element_type=jnp.float32) + params["b1"]
    ref = jnp.maximum(ref, 0.0)
    ref = jnp.dot(ref.astype(jnp.bfloat16), w2b,
                  preferred_element_type=jnp.float32) + params["b2"]
    ref = jnp.maximum(ref, 0.0)
    ref = jnp.dot(ref.astype(jnp.bfloat16), w3b,
                  preferred_element_type=jnp.float32) + params["b3"]

    assert out.shape == (B, NUM_CLASSES)
    assert jnp.allclose(out, ref, atol=2e-2, rtol=2e-2), \
        f"max abs err = {jnp.max(jnp.abs(out - ref))}"

    print("KERNEL_OK")
</pallas_src>

<mosaic_0001>
module attributes {stable_mosaic.version = 11 : i64} {
  func.func @mlp_kernel(%arg0: i32, %arg1: memref<8x768xf32, #tpu.memory_space<vmem>>, %arg2: memref<768x512xbf16, #tpu.memory_space<vmem>>, %arg3: memref<1x512xf32, #tpu.memory_space<vmem>>, %arg4: memref<512x256xbf16, #tpu.memory_space<vmem>>, %arg5: memref<1x256xf32, #tpu.memory_space<vmem>>, %arg6: memref<256x128xbf16, #tpu.memory_space<vmem>>, %arg7: memref<1x128xf32, #tpu.memory_space<vmem>>, %arg8: memref<8x128xf32, #tpu.memory_space<vmem>>) attributes {dimension_semantics = [#tpu.dimension_semantics<parallel>], iteration_bounds = array<i64: 1>, scalar_prefetch = 0 : i64, scratch_operands = 0 : i64, tpu.core_type = #tpu.core_type<tc>, window_params = [{transform_indices = @transform_0, window_bounds = array<i64: 8, 768>}, {pipeline_mode = #tpu.pipeline_mode<synchronous>, transform_indices = @transform_1, window_bounds = array<i64: 768, 512>}, {pipeline_mode = #tpu.pipeline_mode<synchronous>, transform_indices = @transform_2, window_bounds = array<i64: 1, 512>}, {pipeline_mode = #tpu.pipeline_mode<synchronous>, transform_indices = @transform_3, window_bounds = array<i64: 512, 256>}, {pipeline_mode = #tpu.pipeline_mode<synchronous>, transform_indices = @transform_4, window_bounds = array<i64: 1, 256>}, {pipeline_mode = #tpu.pipeline_mode<synchronous>, transform_indices = @transform_5, window_bounds = array<i64: 256, 128>}, {pipeline_mode = #tpu.pipeline_mode<synchronous>, transform_indices = @transform_6, window_bounds = array<i64: 1, 128>}, {transform_indices = @transform_7, window_bounds = array<i64: 8, 128>}]} {
    %c0 = arith.constant 0 : index
    %c0_0 = arith.constant 0 : index
    %0 = vector.load %arg1[%c0, %c0_0] : memref<8x768xf32, #tpu.memory_space<vmem>>, vector<8x768xf32>
    %1 = arith.truncf %0 : vector<8x768xf32> to vector<8x768xbf16>
    %c0_1 = arith.constant 0 : index
    %c0_2 = arith.constant 0 : index
    %2 = vector.load %arg2[%c0_1, %c0_2] : memref<768x512xbf16, #tpu.memory_space<vmem>>, vector<768x512xbf16>
    %cst = arith.constant dense<0.000000e+00> : vector<8x512xf32>
    %3 = tpu.matmul %1, %2, %cst {dimension_numbers = #tpu.dot_dimension_numbers<[1], [0], [0], [1], [0, 0, 1, 1], [], []>} : vector<8x768xbf16>, vector<768x512xbf16>, vector<8x512xf32> -> vector<8x512xf32>
    %c0_3 = arith.constant 0 : index
    %c0_4 = arith.constant 0 : index
    %4 = vector.load %arg3[%c0_3, %c0_4] : memref<1x512xf32, #tpu.memory_space<vmem>>, vector<1x512xf32>
    %5 = vector.broadcast %4 : vector<1x512xf32> to vector<8x512xf32>
    %6 = arith.addf %3, %5 : vector<8x512xf32>
    %cst_5 = arith.constant 0.000000e+00 : f32
    %7 = vector.broadcast %cst_5 : f32 to vector<8x512xf32>
    %8 = arith.maximumf %6, %7 : vector<8x512xf32>
    %9 = arith.truncf %8 : vector<8x512xf32> to vector<8x512xbf16>
    %c0_6 = arith.constant 0 : index
    %c0_7 = arith.constant 0 : index
    %10 = vector.load %arg4[%c0_6, %c0_7] : memref<512x256xbf16, #tpu.memory_space<vmem>>, vector<512x256xbf16>
    %cst_8 = arith.constant dense<0.000000e+00> : vector<8x256xf32>
    %11 = tpu.matmul %9, %10, %cst_8 {dimension_numbers = #tpu.dot_dimension_numbers<[1], [0], [0], [1], [0, 0, 1, 1], [], []>} : vector<8x512xbf16>, vector<512x256xbf16>, vector<8x256xf32> -> vector<8x256xf32>
    %c0_9 = arith.constant 0 : index
    %c0_10 = arith.constant 0 : index
    %12 = vector.load %arg5[%c0_9, %c0_10] : memref<1x256xf32, #tpu.memory_space<vmem>>, vector<1x256xf32>
    %13 = vector.broadcast %12 : vector<1x256xf32> to vector<8x256xf32>
    %14 = arith.addf %11, %13 : vector<8x256xf32>
    %cst_11 = arith.constant 0.000000e+00 : f32
    %15 = vector.broadcast %cst_11 : f32 to vector<8x256xf32>
    %16 = arith.maximumf %14, %15 : vector<8x256xf32>
    %17 = arith.truncf %16 : vector<8x256xf32> to vector<8x256xbf16>
    %c0_12 = arith.constant 0 : index
    %c0_13 = arith.constant 0 : index
    %18 = vector.load %arg6[%c0_12, %c0_13] : memref<256x128xbf16, #tpu.memory_space<vmem>>, vector<256x128xbf16>
    %cst_14 = arith.constant dense<0.000000e+00> : vector<8x128xf32>
    %19 = tpu.matmul %17, %18, %cst_14 {dimension_numbers = #tpu.dot_dimension_numbers<[1], [0], [0], [1], [0, 0, 1, 1], [], []>} : vector<8x256xbf16>, vector<256x128xbf16>, vector<8x128xf32> -> vector<8x128xf32>
    %c0_15 = arith.constant 0 : index
    %c0_16 = arith.constant 0 : index
    %20 = vector.load %arg7[%c0_15, %c0_16] : memref<1x128xf32, #tpu.memory_space<vmem>>, vector<1x128xf32>
    %21 = vector.broadcast %20 : vector<1x128xf32> to vector<8x128xf32>
    %22 = arith.addf %19, %21 : vector<8x128xf32>
    %c0_17 = arith.constant 0 : index
    %c0_18 = arith.constant 0 : index
    %23 = vector.load %arg8[%c0_17, %c0_18] : memref<8x128xf32, #tpu.memory_space<vmem>>, vector<8x128xf32>
    tpu.vector_store %arg8[%c0_17, %c0_18], %22 {strides = array<i32>} : memref<8x128xf32, #tpu.memory_space<vmem>>, vector<8x128xf32>,
    return
  }
  func.func @transform_0(%arg0: i32) -> (i32, i32) {
    %c0_i32 = arith.constant 0 : i32
    %c0_i32_0 = arith.constant 0 : i32
    return %arg0, %c0_i32 : i32, i32
  }
  func.func @transform_1(%arg0: i32) -> (i32, i32) {
    %c0_i32 = arith.constant 0 : i32
    %c0_i32_0 = arith.constant 0 : i32
    %c0_i32_1 = arith.constant 0 : i32
    return %c0_i32, %c0_i32_0 : i32, i32
  }
  func.func @transform_2(%arg0: i32) -> (i32, i32) {
    %c0_i32 = arith.constant 0 : i32
    %c0_i32_0 = arith.constant 0 : i32
    %c0_i32_1 = arith.constant 0 : i32
    return %c0_i32, %c0_i32_0 : i32, i32
  }
  func.func @transform_3(%arg0: i32) -> (i32, i32) {
    %c0_i32 = arith.constant 0 : i32
    %c0_i32_0 = arith.constant 0 : i32
    %c0_i32_1 = arith.constant 0 : i32
    return %c0_i32, %c0_i32_0 : i32, i32
  }
  func.func @transform_4(%arg0: i32) -> (i32, i32) {
    %c0_i32 = arith.constant 0 : i32
    %c0_i32_0 = arith.constant 0 : i32
    %c0_i32_1 = arith.constant 0 : i32
    return %c0_i32, %c0_i32_0 : i32, i32
  }
  func.func @transform_5(%arg0: i32) -> (i32, i32) {
    %c0_i32 = arith.constant 0 : i32
    %c0_i32_0 = arith.constant 0 : i32
    %c0_i32_1 = arith.constant 0 : i32
    return %c0_i32, %c0_i32_0 : i32, i32
  }
  func.func @transform_6(%arg0: i32) -> (i32, i32) {
    %c0_i32 = arith.constant 0 : i32
    %c0_i32_0 = arith.constant 0 : i32
    %c0_i32_1 = arith.constant 0 : i32
    return %c0_i32, %c0_i32_0 : i32, i32
  }
  func.func @transform_7(%arg0: i32) -> (i32, i32) {
    %c0_i32 = arith.constant 0 : i32
    %c0_i32_0 = arith.constant 0 : i32
    return %arg0, %c0_i32 : i32, i32
  }
}

</mosaic_0001>

<bundles_post_ra>
// kernel: tpu_custom_call.1
= control target key start
LH: loop header
LB: loop body
LE: loop exit
PB: predicated region body
PF: predicated region fallthrough
CT: control target
= control target key end

     0   :  { %12 = vsyncpa [#allocation3], 0  ;;  %s3208_s0 = inlined_call_operand.hbm [shape: f32[8,768], index: 0, kind: input, shape index: {}]   ;;  %s3209_s1 = inlined_call_operand.hbm [shape: bf16[768,512], index: 1, kind: input, shape index: {}]   ;;  %s3210_s2 = inlined_call_operand.vmem [shape: f32[1,512], index: 2, kind: input, shape index: {}]   ;;  %s3211_s3 = inlined_call_operand.hbm [shape: bf16[512,256], index: 3, kind: input, shape index: {}]   ;;  %s3212_s4 = inlined_call_operand.vmem [shape: f32[1,256], index: 4, kind: input, shape index: {}]   ;;  %s3213_s5 = inlined_call_operand.hbm [shape: bf16[256,128], index: 5, kind: input, shape index: {}]   ;;  %s3214_s6 = inlined_call_operand.vmem [shape: f32[1,128], index: 6, kind: input, shape index: {}]   ;;  %s3215_s7 = inlined_call_operand.hbm [shape: f32[8,128], index: 7, kind: output, shape index: {}]  }
   0x1   :  { %13 = vsyncpa [#allocation6], 0 }
   0x2   :  { %14 = vsyncpa [#allocation9], 0 }
   0x3   :  { %15 = vsyncpa [#allocation4], 0  ;;  %s3044_s24 = smov [#allocation5]   ;;  %s2926_s28 = scalar_lea.hbm %s3209_s1, 24576 }
   0x4   :  { %s31_s25 = sshll.u32 %s3044_s24, 4  ;;  %p2927_p0 = scmp.ne.s32.totalorder %s3209_s1, %s2926_s28  ;;  %s32_s25 = int_to_ptr.vmem [resolvable:$true] %s31_s25 }
   0x5   :  { %p2930_p1 = scmp.lt.u32.totalorder %s2926_s28, %s3209_s1 }
   0x7   :  { %p2932_p2 = pnand %p2930_p1, %p2927_p0 }
   0x9   :  { %2935 = shalt.err (!%p2932_p2)
}
   0xa   :  { %s2936_s10 = scalar_lea.vmem %s32_s25, 24576  ;;  %p2941_p4 = scmp.lt.s32.totalorder %s32_s25, %s32_s25 }
   0xb   :  { %p2937_p3 = scmp.ne.s32.totalorder %s32_s25, %s2936_s10  ;;  %p2942_p5 = scmp.lt.s32.totalorder %s2936_s10, %s2936_s10 }
   0xd   :  { %p2943_p6 = por %p2942_p5, %p2941_p4 }
   0xf   :  { %p2944_p7 = pnand %p2943_p6, %p2937_p3 }
  0x11   :  { %2947 = shalt.err (!%p2944_p7)
}
  0x12   :  { %s3045_s11 = smov 256   ;;  %s3046_s12 = smov 16  }
  0x13   :  { %37 = dma.hbm_to_vmem [thread:$0]  %s3209_s1, 24576, %s32_s25, [#allocation6], %s3045_s11, %s3045_s11, %s3046_s12  }
  0x14   :  { %s3047_s15 = smov [#allocation2]   ;;  %s3048_s17 = smov [#allocation7]  }
  0x15   :  { %s22_s16 = sshll.u32 %s3047_s15, 4  ;;  %s45_s18 = sshll.u32 %s3048_s17, 4  ;;  %s23_s16 = int_to_ptr.vmem [resolvable:$true] %s22_s16  ;;  %s46_s18 = int_to_ptr.vmem [resolvable:$true] %s45_s18 }
  0x16   :  { %s2948_s21 = scalar_lea.hbm %s3208_s0, 768 }
  0x17   :  { %p2949_p8 = scmp.ne.s32.totalorder %s3208_s0, %s2948_s21  ;;  %p2952_p9 = scmp.lt.u32.totalorder %s2948_s21, %s3208_s0 }
  0x19   :  { %p2954_p10 = pnand %p2952_p9, %p2949_p8 }
  0x1b   :  { %2957 = shalt.err (!%p2954_p10)
}
  0x1c   :  { %s2958_s1 = scalar_lea.vmem %s23_s16, 768  ;;  %p2963_p12 = scmp.lt.s32.totalorder %s23_s16, %s23_s16 }
  0x1d   :  { %p2959_p11 = scmp.ne.s32.totalorder %s23_s16, %s2958_s1  ;;  %p2964_p13 = scmp.lt.s32.totalorder %s2958_s1, %s2958_s1 }
  0x1f   :  { %p2965_p0 = por %p2964_p13, %p2963_p12 }
  0x21   :  { %p2966_p1 = pnand %p2965_p0, %p2959_p11 }
  0x23   :  { %2969 = shalt.err (!%p2966_p1)
}
  0x24   :  { %25 = dma.hbm_to_vmem [thread:$0]  %s3208_s0, 768, %s23_s16, [#allocation3]  }
  0x25   :  { %s2970_s30 = scalar_lea.hbm %s3211_s3, 8192 }
  0x26   :  { %p2971_p2 = scmp.ne.s32.totalorder %s3211_s3, %s2970_s30  ;;  %p2974_p3 = scmp.lt.u32.totalorder %s2970_s30, %s3211_s3 }
  0x28   :  { %p2976_p4 = pnand %p2974_p3, %p2971_p2 }
  0x2a   :  { %2979 = shalt.err (!%p2976_p4)
}
  0x2b   :  { %s2980_s12 = scalar_lea.vmem %s46_s18, 8192  ;;  %p2985_p6 = scmp.lt.s32.totalorder %s46_s18, %s46_s18 }
  0x2c   :  { %p2981_p5 = scmp.ne.s32.totalorder %s46_s18, %s2980_s12  ;;  %p2986_p7 = scmp.lt.s32.totalorder %s2980_s12, %s2980_s12 }
  0x2e   :  { %p2987_p8 = por %p2986_p7, %p2985_p6 }
  0x30   :  { %p2988_p9 = pnand %p2987_p8, %p2981_p5 }
  0x32   :  { %2991 = shalt.err (!%p2988_p9)
}
  0x33   :  { %s3049_s0 = smov 128   ;;  %s3050_s13 = smov 8  }
  0x34   :  { %51 = dma.hbm_to_vmem [thread:$0]  %s3211_s3, 8192, %s46_s18, [#allocation6], %s3049_s0, %s3049_s0, %s3050_s13  }
  0x35   :  { %s3051_s16 = smov [#allocation8]   ;;  %s2992_s21 = scalar_lea.hbm %s3213_s5, 2048 }
  0x36   :  { %s59_s17 = sshll.u32 %s3051_s16, 4  ;;  %p2993_p10 = scmp.ne.s32.totalorder %s3213_s5, %s2992_s21  ;;  %s60_s17 = int_to_ptr.vmem [resolvable:$true] %s59_s17 }
  0x37   :  { %p2996_p11 = scmp.lt.u32.totalorder %s2992_s21, %s3213_s5 }
  0x39   :  { %p2998_p12 = pnand %p2996_p11, %p2993_p10 }
  0x3b   :  { %3001 = shalt.err (!%p2998_p12)
}
  0x3c   :  { %s3002_s1 = scalar_lea.vmem %s60_s17, 2048  ;;  %p3007_p0 = scmp.lt.s32.totalorder %s60_s17, %s60_s17 }
  0x3d   :  { %p3003_p13 = scmp.ne.s32.totalorder %s60_s17, %s3002_s1  ;;  %p3008_p1 = scmp.lt.s32.totalorder %s3002_s1, %s3002_s1 }
  0x3f   :  { %p3009_p2 = por %p3008_p1, %p3007_p0 }
  0x41   :  { %p3010_p3 = pnand %p3009_p2, %p3003_p13 }
  0x43   :  { %3013 = shalt.err (!%p3010_p3)
}
  0x44   :  { %s3052_s3 = smov 64   ;;  %s3053_s18 = smov 4  }
  0x45   :  { %65 = dma.hbm_to_vmem [thread:$0]  %s3213_s5, 2048, %s60_s17, [#allocation9], %s3052_s3, %s3052_s3, %s3053_s18  }
  0x46   :  { %3036 = dma.done.wait [#allocation3], 768  }
  0x47   :  { %3037 = vsyncadd [#allocation3], 4294966528 }
  0x48   :  { %3038 = dma.done.wait [#allocation6], 32768  }
  0x49   :  { %3039 = vsyncadd [#allocation6], 4294934528 }
  0x4a   :  { %3040 = dma.done.wait [#allocation9], 2048  }
  0x4b   :  { %3041 = vsyncadd [#allocation9], 4294965248  ;;  %v2526_v0 = vld [vmem:[#allocation5 + $0x4] ss:$16 sps:$4 sm:$0xff]   ;;  %v2530_v2 = vld [vmem:[#allocation5] ss:$16 sps:$4 sm:$0xff]  }
  0x4c   :  { %v2528_v1 = vld [vmem:[#allocation5 + $0x204] ss:$16 sps:$4 sm:$0xff]   ;;  %1267 = vmatprep.subr.bf16.mxu1 %v2526_v0  ;;  %v2531_v3 = vld [vmem:[#allocation5 + $0x200] ss:$16 sps:$4 sm:$0xff]   ;;  %v82_v46 = vld [vmem:[#allocation2 + $0x8] sm:$0xff]  ;;  %s3054_s8 = smov [#allocation10]  }
  0x4d   :  { %1308 = vmatprep.subr.bf16.mxu0 %v2528_v1  ;;  %v2532_v4 = vld [vmem:[#allocation5 + $0x24] ss:$16 sps:$4 sm:$0xff]   ;;  %1268 = vmatpush1.bf16.msra.mxu1 %v2530_v2  ;;  %v2536_v6 = vld [vmem:[#allocation5 + $0x20] ss:$16 sps:$4 sm:$0xff]   ;;  %v3143_v48 = vpack.c.bf16 %v82_v46, %v82_v46  ;;  %v84_v49 = vld [vmem:[#allocation2 + $0x18] sm:$0xff]  ;;  %s2185_s9 = sshll.u32 %s3054_s8, 4  ;;  %s2186_s9 = int_to_ptr.vmem [resolvable:$true] %s2185_s9 }
  0x4e   :  { %1309 = vmatpush1.bf16.msra.mxu0 %v2531_v3  ;;  %v2534_v5 = vld [vmem:[#allocation5 + $0x224] ss:$16 sps:$4 sm:$0xff]   ;;  %1269 = vmatprep.subr.bf16.mxu1 %v2532_v4  ;;  %v2537_v7 = vld [vmem:[#allocation5 + $0x220] ss:$16 sps:$4 sm:$0xff]   ;;  %v3145_v52 = vpack.c.bf16 %v84_v49, %v84_v49  ;;  %v2679_v49 = vld [vmem:[#allocation5 + $0x128] ss:$16 sps:$4 sm:$0xff]   ;;  %p3019_p5 = scmp.lt.s32.totalorder %s2186_s9, %s2186_s9 }
  0x4f   :  { %1310 = vmatprep.subr.bf16.mxu0 %v2534_v5  ;;  %v2538_v8 = vld [vmem:[#allocation5 + $0x44] ss:$16 sps:$4 sm:$0xff]   ;;  %v2542_v10 = vld [vmem:[#allocation5 + $0x40] ss:$16 sps:$4 sm:$0xff]   ;;  %1299 = vmatprep.mubr.bf16.mxu1 %v3143_v48  ;;  %s3014_s10 = scalar_lea.vmem %s2186_s9, 128 }
  0x50   :  { %v2540_v9 = vld [vmem:[#allocation5 + $0x244] ss:$16 sps:$4 sm:$0xff]   ;;  %v2543_v11 = vld [vmem:[#allocation5 + $0x240] ss:$16 sps:$4 sm:$0xff]   ;;  %1340 = vmatprep.mubr.bf16.mxu0 %v3145_v52  ;;  %p3015_p4 = scmp.ne.s32.totalorder %s2186_s9, %s3014_s10  ;;  %p3020_p6 = scmp.lt.s32.totalorder %s3014_s10, %s3014_s10 }
  0x51   :  { %1270 = vmatpush1.bf16.msra.mxu1 %v2536_v6  ;;  %v2544_v12 = vld [vmem:[#allocation5 + $0x64] ss:$16 sps:$4 sm:$0xff]   ;;  %v2548_v14 = vld [vmem:[#allocation5 + $0x60] ss:$16 sps:$4 sm:$0xff]  }
  0x52   :  { %1311 = vmatpush1.bf16.msra.mxu0 %v2537_v7  ;;  %1271 = vmatprep.subr.bf16.mxu1 %v2538_v8  ;;  %v2546_v13 = vld [vmem:[#allocation5 + $0x264] ss:$16 sps:$4 sm:$0xff]   ;;  %v2549_v15 = vld [vmem:[#allocation5 + $0x260] ss:$16 sps:$4 sm:$0xff]   ;;  %v2627_v7 = vld [vmem:[#allocation5 + $0xc] ss:$16 sps:$4 sm:$0xff]   ;;  %p3021_p7 = por %p3020_p6, %p3019_p5 }
  0x53   :  { %1312 = vmatprep.subr.bf16.mxu0 %v2540_v9  ;;  %v2550_v16 = vld [vmem:[#allocation5 + $0x84] ss:$16 sps:$4 sm:$0xff]   ;;  %v2554_v18 = vld [vmem:[#allocation5 + $0x80] ss:$16 sps:$4 sm:$0xff]  }
  0x54   :  { %v2552_v17 = vld [vmem:[#allocation5 + $0x284] ss:$16 sps:$4 sm:$0xff]   ;;  %v2555_v19 = vld [vmem:[#allocation5 + $0x280] ss:$16 sps:$4 sm:$0xff]   ;;  %p3022_p8 = pnand %p3021_p7, %p3015_p4 }
  0x55   :  { %1272 = vmatpush1.bf16.msra.mxu1 %v2542_v10  ;;  %v2556_v20 = vld [vmem:[#allocation5 + $0xa4] ss:$16 sps:$4 sm:$0xff]   ;;  %v2560_v22 = vld [vmem:[#allocation5 + $0xa0] ss:$16 sps:$4 sm:$0xff]   ;;  %v2625_v10 = vld [vmem:[#allocation5 + $0x8] ss:$16 sps:$4 sm:$0xff]  }
  0x56   :  { %1313 = vmatpush1.bf16.msra.mxu0 %v2543_v11  ;;  %1273 = vmatprep.subr.bf16.mxu1 %v2544_v12  ;;  %v2558_v21 = vld [vmem:[#allocation5 + $0x2a4] ss:$16 sps:$4 sm:$0xff]   ;;  %v2561_v23 = vld [vmem:[#allocation5 + $0x2a0] ss:$16 sps:$4 sm:$0xff]  }
  0x57   :  { %1314 = vmatprep.subr.bf16.mxu0 %v2546_v13  ;;  %v2562_v24 = vld [vmem:[#allocation5 + $0xc4] ss:$16 sps:$4 sm:$0xff]   ;;  %v2566_v26 = vld [vmem:[#allocation5 + $0xc0] ss:$16 sps:$4 sm:$0xff]   ;;  %v2633_v13 = vld [vmem:[#allocation5 + $0x2c] ss:$16 sps:$4 sm:$0xff]  }
  0x58   :  { %v2564_v25 = vld [vmem:[#allocation5 + $0x2c4] ss:$16 sps:$4 sm:$0xff]   ;;  %v2567_v27 = vld [vmem:[#allocation5 + $0x2c0] ss:$16 sps:$4 sm:$0xff]  }
  0x59   :  { %1274 = vmatpush1.bf16.msra.mxu1 %v2548_v14  ;;  %v2568_v28 = vld [vmem:[#allocation5 + $0xe4] ss:$16 sps:$4 sm:$0xff]   ;;  %v2572_v30 = vld [vmem:[#allocation5 + $0xe0] ss:$16 sps:$4 sm:$0xff]  }
  0x5a   :  { %1315 = vmatpush1.bf16.msra.mxu0 %v2549_v15  ;;  %1275 = vmatprep.subr.bf16.mxu1 %v2550_v16  ;;  %v2570_v29 = vld [vmem:[#allocation5 + $0x2e4] ss:$16 sps:$4 sm:$0xff]   ;;  %v2573_v31 = vld [vmem:[#allocation5 + $0x2e0] ss:$16 sps:$4 sm:$0xff]   ;;  %v2631_v15 = vld [vmem:[#allocation5 + $0x28] ss:$16 sps:$4 sm:$0xff]  }
  0x5b   :  { %1316 = vmatprep.subr.bf16.mxu0 %v2552_v17  ;;  %v2574_v32 = vld [vmem:[#allocation5 + $0x104] ss:$16 sps:$4 sm:$0xff]   ;;  %v2578_v34 = vld [vmem:[#allocation5 + $0x100] ss:$16 sps:$4 sm:$0xff]   ;;  %v2639_v17 = vld [vmem:[#allocation5 + $0x4c] ss:$16 sps:$4 sm:$0xff]  }
  0x5c   :  { %v2576_v33 = vld [vmem:[#allocation5 + $0x304] ss:$16 sps:$4 sm:$0xff]   ;;  %v2579_v35 = vld [vmem:[#allocation5 + $0x300] ss:$16 sps:$4 sm:$0xff]  }
  0x5d   :  { %1276 = vmatpush1.bf16.msra.mxu1 %v2554_v18  ;;  %v2580_v36 = vld [vmem:[#allocation5 + $0x124] ss:$16 sps:$4 sm:$0xff]   ;;  %v2584_v38 = vld [vmem:[#allocation5 + $0x120] ss:$16 sps:$4 sm:$0xff]  }
  0x5e   :  { %1317 = vmatpush1.bf16.msra.mxu0 %v2555_v19  ;;  %1277 = vmatprep.subr.bf16.mxu1 %v2556_v20  ;;  %v2582_v37 = vld [vmem:[#allocation5 + $0x324] ss:$16 sps:$4 sm:$0xff]   ;;  %v2585_v39 = vld [vmem:[#allocation5 + $0x320] ss:$16 sps:$4 sm:$0xff]   ;;  %v2637_v19 = vld [vmem:[#allocation5 + $0x48] ss:$16 sps:$4 sm:$0xff]  }
  0x5f   :  { %1318 = vmatprep.subr.bf16.mxu0 %v2558_v21  ;;  %v2586_v40 = vld [vmem:[#allocation5 + $0x144] ss:$16 sps:$4 sm:$0xff]   ;;  %v2590_v42 = vld [vmem:[#allocation5 + $0x140] ss:$16 sps:$4 sm:$0xff]   ;;  %v2645_v21 = vld [vmem:[#allocation5 + $0x6c] ss:$16 sps:$4 sm:$0xff]  }
  0x60   :  { %v2588_v41 = vld [vmem:[#allocation5 + $0x344] ss:$16 sps:$4 sm:$0xff]   ;;  %v2591_v43 = vld [vmem:[#allocation5 + $0x340] ss:$16 sps:$4 sm:$0xff]  }
  0x61   :  { %1278 = vmatpush1.bf16.msra.mxu1 %v2560_v22  ;;  %v2592_v44 = vld [vmem:[#allocation5 + $0x164] ss:$16 sps:$4 sm:$0xff]   ;;  %v2596_v47 = vld [vmem:[#allocation5 + $0x160] ss:$16 sps:$4 sm:$0xff]  }
  0x62   :  { %1319 = vmatpush1.bf16.msra.mxu0 %v2561_v23  ;;  %1279 = vmatprep.subr.bf16.mxu1 %v2562_v24  ;;  %v2594_v45 = vld [vmem:[#allocation5 + $0x364] ss:$16 sps:$4 sm:$0xff]   ;;  %v2597_v50 = vld [vmem:[#allocation5 + $0x360] ss:$16 sps:$4 sm:$0xff]   ;;  %v2643_v23 = vld [vmem:[#allocation5 + $0x68] ss:$16 sps:$4 sm:$0xff]  }
  0x63   :  { %1320 = vmatprep.subr.bf16.mxu0 %v2564_v25  ;;  %v2598_v51 = vld [vmem:[#allocation5 + $0x184] ss:$16 sps:$4 sm:$0xff]   ;;  %v2602_v54 = vld [vmem:[#allocation5 + $0x180] ss:$16 sps:$4 sm:$0xff]   ;;  %v2651_v25 = vld [vmem:[#allocation5 + $0x8c] ss:$16 sps:$4 sm:$0xff]  }
  0x64   :  { %v2600_v53 = vld [vmem:[#allocation5 + $0x384] ss:$16 sps:$4 sm:$0xff]   ;;  %v2603_v55 = vld [vmem:[#allocation5 + $0x380] ss:$16 sps:$4 sm:$0xff]  }
  0x65   :  { %1280 = vmatpush1.bf16.msra.mxu1 %v2566_v26  ;;  %v2604_v56 = vld [vmem:[#allocation5 + $0x1a4] ss:$16 sps:$4 sm:$0xff]   ;;  %v2608_v58 = vld [vmem:[#allocation5 + $0x1a0] ss:$16 sps:$4 sm:$0xff]  }
  0x66   :  { %1321 = vmatpush1.bf16.msra.mxu0 %v2567_v27  ;;  %1281 = vmatprep.subr.bf16.mxu1 %v2568_v28  ;;  %v2606_v57 = vld [vmem:[#allocation5 + $0x3a4] ss:$16 sps:$4 sm:$0xff]   ;;  %v2609_v59 = vld [vmem:[#allocation5 + $0x3a0] ss:$16 sps:$4 sm:$0xff]   ;;  %v2649_v27 = vld [vmem:[#allocation5 + $0x88] ss:$16 sps:$4 sm:$0xff]  }
  0x67   :  { %1322 = vmatprep.subr.bf16.mxu0 %v2570_v29  ;;  %v2610_v60 = vld [vmem:[#allocation5 + $0x1c4] ss:$16 sps:$4 sm:$0xff]   ;;  %v2614_v62 = vld [vmem:[#allocation5 + $0x1c0] ss:$16 sps:$4 sm:$0xff]   ;;  %v2657_v29 = vld [vmem:[#allocation5 + $0xac] ss:$16 sps:$4 sm:$0xff]  }
  0x68   :  { %v2612_v61 = vld [vmem:[#allocation5 + $0x3c4] ss:$16 sps:$4 sm:$0xff]   ;;  %v2615_v63 = vld [vmem:[#allocation5 + $0x3c0] ss:$16 sps:$4 sm:$0xff]  }
  0x69   :  { %1282 = vmatpush1.bf16.msra.mxu1 %v2572_v30  ;;  %v2616_v0 = vld [vmem:[#allocation5 + $0x1e4] ss:$16 sps:$4 sm:$0xff]   ;;  %v2620_v2 = vld [vmem:[#allocation5 + $0x1e0] ss:$16 sps:$4 sm:$0xff]  }
  0x6a   :  { %1323 = vmatpush1.bf16.msra.mxu0 %v2573_v31  ;;  %1283 = vmatprep.subr.bf16.mxu1 %v2574_v32  ;;  %v2618_v1 = vld [vmem:[#allocation5 + $0x3e4] ss:$16 sps:$4 sm:$0xff]   ;;  %v2621_v3 = vld [vmem:[#allocation5 + $0x3e0] ss:$16 sps:$4 sm:$0xff]   ;;  %v2655_v31 = vld [vmem:[#allocation5 + $0xa8] ss:$16 sps:$4 sm:$0xff]  }
  0x6b   :  { %1324 = vmatprep.subr.bf16.mxu0 %v2576_v33  ;;  %v81_v4 = vld [vmem:[#allocation2] sm:$0xff]  ;;  %v83_v6 = vld [vmem:[#allocation2 + $0x10] sm:$0xff]  ;;  %v2663_v33 = vld [vmem:[#allocation5 + $0xcc] ss:$16 sps:$4 sm:$0xff]  }
  0x6c   :  { %v2624_v5 = vld [vmem:[#allocation5 + $0x404] ss:$16 sps:$4 sm:$0xff]   ;;  %v3149_v8 = vpack.c.bf16 %v81_v4, %v81_v4  ;;  %v2622_v9 = vld [vmem:[#allocation5 + $0x400] ss:$16 sps:$4 sm:$0xff]   ;;  %v3151_v11 = vpack.c.bf16 %v83_v6, %v83_v6  ;;  %v2711_v4 = vld [vmem:[#allocation5 + $0x1cc] ss:$16 sps:$4 sm:$0xff]  }
  0x6d   :  { %1284 = vmatpush1.bf16.msra.mxu1 %v2578_v34  ;;  %v2630_v12 = vld [vmem:[#allocation5 + $0x424] ss:$16 sps:$4 sm:$0xff]   ;;  %v2628_v14 = vld [vmem:[#allocation5 + $0x420] ss:$16 sps:$4 sm:$0xff]   ;;  %v86_v34 = vld [vmem:[#allocation2 + $0x28] sm:$0xff] }
  0x6e   :  { %1325 = vmatpush1.bf16.msra.mxu0 %v2579_v35  ;;  %1285 = vmatprep.subr.bf16.mxu1 %v2580_v36  ;;  %v2636_v16 = vld [vmem:[#allocation5 + $0x444] ss:$16 sps:$4 sm:$0xff]   ;;  %v2634_v18 = vld [vmem:[#allocation5 + $0x440] ss:$16 sps:$4 sm:$0xff]   ;;  %v3156_v35 = vpack.c.bf16 %v86_v34, %v86_v34  ;;  %v2709_v6 = vld [vmem:[#allocation5 + $0x1c8] ss:$16 sps:$4 sm:$0xff]  }
  0x6f   :  { %1326 = vmatprep.subr.bf16.mxu0 %v2582_v37  ;;  %v2642_v20 = vld [vmem:[#allocation5 + $0x464] ss:$16 sps:$4 sm:$0xff]   ;;  %v2640_v22 = vld [vmem:[#allocation5 + $0x460] ss:$16 sps:$4 sm:$0xff]   ;;  %v2661_v37 = vld [vmem:[#allocation5 + $0xc8] ss:$16 sps:$4 sm:$0xff]  }
  0x70   :  { %v2648_v24 = vld [vmem:[#allocation5 + $0x484] ss:$16 sps:$4 sm:$0xff]   ;;  %v2646_v26 = vld [vmem:[#allocation5 + $0x480] ss:$16 sps:$4 sm:$0xff]  }
  0x71   :  { %1286 = vmatpush1.bf16.msra.mxu1 %v2584_v38  ;;  %v2654_v28 = vld [vmem:[#allocation5 + $0x4a4] ss:$16 sps:$4 sm:$0xff]   ;;  %v2652_v30 = vld [vmem:[#allocation5 + $0x4a0] ss:$16 sps:$4 sm:$0xff]  }
  0x72   :  { %1327 = vmatpush1.bf16.msra.mxu0 %v2585_v39  ;;  %1287 = vmatprep.subr.bf16.mxu1 %v2586_v40  ;;  %v2660_v32 = vld [vmem:[#allocation5 + $0x4c4] ss:$16 sps:$4 sm:$0xff]   ;;  %v2658_v36 = vld [vmem:[#allocation5 + $0x4c0] ss:$16 sps:$4 sm:$0xff]   ;;  %v2669_v39 = vld [vmem:[#allocation5 + $0xec] ss:$16 sps:$4 sm:$0xff]  }
  0x73   :  { %1328 = vmatprep.subr.bf16.mxu0 %v2588_v41  ;;  %v2666_v38 = vld [vmem:[#allocation5 + $0x4e4] ss:$16 sps:$4 sm:$0xff]   ;;  %v2664_v40 = vld [vmem:[#allocation5 + $0x4e0] ss:$16 sps:$4 sm:$0xff]   ;;  %v2667_v41 = vld [vmem:[#allocation5 + $0xe8] ss:$16 sps:$4 sm:$0xff]  }
  0x74   :  { %v2678_v46 = vld [vmem:[#allocation5 + $0x524] ss:$16 sps:$4 sm:$0xff]  }
  0x75   :  { %1288 = vmatpush1.bf16.msra.mxu1 %v2590_v42  ;;  %v2672_v42 = vld [vmem:[#allocation5 + $0x504] ss:$16 sps:$4 sm:$0xff]  }
  0x76   :  { %1329 = vmatpush1.bf16.msra.mxu0 %v2591_v43  ;;  %1289 = vmatprep.subr.bf16.mxu1 %v2592_v44  ;;  %v2675_v43 = vld [vmem:[#allocation5 + $0x10c] ss:$16 sps:$4 sm:$0xff]   ;;  %v2670_v44 = vld [vmem:[#allocation5 + $0x500] ss:$16 sps:$4 sm:$0xff]  }
  0x77   :  { %1330 = vmatprep.subr.bf16.mxu0 %v2594_v45  ;;  %v2673_v45 = vld [vmem:[#allocation5 + $0x108] ss:$16 sps:$4 sm:$0xff]   ;;  %v2822_v34 = vld [vmem:[#allocation7 + $0x24] ss:$8 sps:$4 sm:$0xff]  }
  0x79   :  { %1290 = vmatpush1.bf16.msra.mxu1 %v2596_v47  ;;  %v2681_v47 = vld [vmem:[#allocation5 + $0x12c] ss:$16 sps:$4 sm:$0xff]  }
  0x7a   :  { %1331 = vmatpush1.bf16.msra.mxu0 %v2597_v50  ;;  %1291 = vmatprep.subr.bf16.mxu1 %v2598_v51  ;;  %v2684_v50 = vld [vmem:[#allocation5 + $0x544] ss:$16 sps:$4 sm:$0xff]   ;;  %v2687_v51 = vld [vmem:[#allocation5 + $0x14c] ss:$16 sps:$4 sm:$0xff]  }
  0x7b   :  { %1332 = vmatprep.subr.bf16.mxu0 %v2600_v53  ;;  %v2682_v53 = vld [vmem:[#allocation5 + $0x540] ss:$16 sps:$4 sm:$0xff]  }
  0x7d   :  { %1292 = vmatpush1.bf16.msra.mxu1 %v2602_v54  ;;  %v2685_v54 = vld [vmem:[#allocation5 + $0x148] ss:$16 sps:$4 sm:$0xff]  }
  0x7e   :  { %1333 = vmatpush1.bf16.msra.mxu0 %v2603_v55  ;;  %1293 = vmatprep.subr.bf16.mxu1 %v2604_v56  ;;  %v2690_v55 = vld [vmem:[#allocation5 + $0x564] ss:$16 sps:$4 sm:$0xff]   ;;  %v2693_v56 = vld [vmem:[#allocation5 + $0x16c] ss:$16 sps:$4 sm:$0xff]  }
  0x7f   :  { %1334 = vmatprep.subr.bf16.mxu0 %v2606_v57  ;;  %v2688_v57 = vld [vmem:[#allocation5 + $0x560] ss:$16 sps:$4 sm:$0xff]  }
  0x81   :  { %1294 = vmatpush1.bf16.msra.mxu1 %v2608_v58  ;;  %v2691_v58 = vld [vmem:[#allocation5 + $0x168] ss:$16 sps:$4 sm:$0xff]  }
  0x82   :  { %1335 = vmatpush1.bf16.msra.mxu0 %v2609_v59  ;;  %1295 = vmatprep.subr.bf16.mxu1 %v2610_v60  ;;  %v2696_v59 = vld [vmem:[#allocation5 + $0x584] ss:$16 sps:$4 sm:$0xff]   ;;  %v2699_v60 = vld [vmem:[#allocation5 + $0x18c] ss:$16 sps:$4 sm:$0xff]  }
  0x83   :  { %1336 = vmatprep.subr.bf16.mxu0 %v2612_v61  ;;  %v2694_v61 = vld [vmem:[#allocation5 + $0x580] ss:$16 sps:$4 sm:$0xff]  }
  0x85   :  { %1296 = vmatpush1.bf16.msra.mxu1 %v2614_v62  ;;  %v2697_v62 = vld [vmem:[#allocation5 + $0x188] ss:$16 sps:$4 sm:$0xff]  }
  0x86   :  { %1337 = vmatpush1.bf16.msra.mxu0 %v2615_v63  ;;  %1297 = vmatprep.subr.bf16.mxu1 %v2616_v0  ;;  %v2702_v63 = vld [vmem:[#allocation5 + $0x5a4] ss:$16 sps:$4 sm:$0xff]   ;;  %v2705_v0 = vld [vmem:[#allocation5 + $0x1ac] ss:$16 sps:$4 sm:$0xff]  }
  0x87   :  { %1338 = vmatprep.subr.bf16.mxu0 %v2618_v1  ;;  %v2700_v1 = vld [vmem:[#allocation5 + $0x5a0] ss:$16 sps:$4 sm:$0xff]  }
  0x89   :  { %1298 = vmatpush1.bf16.msra.mxu1 %v2620_v2  ;;  %v2703_v2 = vld [vmem:[#allocation5 + $0x1a8] ss:$16 sps:$4 sm:$0xff]  }
  0x8a   :  { %1339 = vmatpush1.bf16.msra.mxu0 %v2621_v3  ;;  %1390 = vmatprep.subr.bf16.mxu1 %v2627_v7  ;;  %v2708_v3 = vld [vmem:[#allocation5 + $0x5c4] ss:$16 sps:$4 sm:$0xff]  }
  0x8b   :  { %1349 = vmatprep.subr.bf16.mxu0 %v2624_v5  ;;  %v2706_v5 = vld [vmem:[#allocation5 + $0x5c0] ss:$16 sps:$4 sm:$0xff]   ;;  %v2714_v7 = vld [vmem:[#allocation5 + $0x5e4] ss:$16 sps:$4 sm:$0xff]  }
  0x8c   :  { %1300 = vmatmul.mubr.bf16.vlgmr.msra.gmra.mrb[0].mxu1 %v3149_v8 }
  0x8d   :  { %1341 = vmatmul.mubr.bf16.vlgmr.msra.gmra.mrb[0].mxu0 %v3151_v11  ;;  %1391 = vmatpush1.bf16.msra.mxu1 %v2625_v10  ;;  %v2712_v10 = vld [vmem:[#allocation5 + $0x5e0] ss:$16 sps:$4 sm:$0xff]  }
  0x8e   :  { %1350 = vmatpush1.bf16.msra.mxu0 %v2622_v9  ;;  %1392 = vmatprep.subr.bf16.mxu1 %v2633_v13  ;;  %v2717_v9 = vld [vmem:[#allocation5 + $0x1ec] ss:$16 sps:$4 sm:$0xff]   ;;  %v85_v13 = vld [vmem:[#allocation2 + $0x20] sm:$0xff] }
  0x8f   :  { %1351 = vmatprep.subr.bf16.mxu0 %v2630_v12  ;;  %1422 = vmatprep.mubr.bf16.mxu1 %v3143_v48  ;;  %v2676_v48 = vld [vmem:[#allocation5 + $0x520] ss:$16 sps:$4 sm:$0xff]   ;;  %v2715_v12 = vld [vmem:[#allocation5 + $0x1e8] ss:$16 sps:$4 sm:$0xff]  }
  0x90   :  { %1381 = vmatprep.mubr.bf16.mxu0 %v3156_v35 }
  0x91   :  { %1393 = vmatpush1.bf16.msra.mxu1 %v2631_v15  ;;  %v3159_v15 = vpack.c.bf16 %v85_v13, %v85_v13  ;;  %v2847_v13 = vld [vmem:[#allocation7 + $0xb0] ss:$8 sps:$4 sm:$0xff]  }
  0x92   :  { %1352 = vmatpush1.bf16.msra.mxu0 %v2628_v14  ;;  %1394 = vmatprep.subr.bf16.mxu1 %v2639_v17  ;;  %v2720_v14 = vld [vmem:[#allocation5 + $0x20c] ss:$16 sps:$4 sm:$0xff]  }
  0x93   :  { %1353 = vmatprep.subr.bf16.mxu0 %v2636_v16  ;;  %v2718_v16 = vld [vmem:[#allocation5 + $0x208] ss:$16 sps:$4 sm:$0xff]   ;;  %v2723_v17 = vld [vmem:[#allocation5 + $0x22c] ss:$16 sps:$4 sm:$0xff]  }
  0x95   :  { %1395 = vmatpush1.bf16.msra.mxu1 %v2637_v19  ;;  %v2726_v19 = vld [vmem:[#allocation5 + $0x24c] ss:$16 sps:$4 sm:$0xff]  }
  0x96   :  { %1354 = vmatpush1.bf16.msra.mxu0 %v2634_v18  ;;  %1396 = vmatprep.subr.bf16.mxu1 %v2645_v21  ;;  %v2721_v18 = vld [vmem:[#allocation5 + $0x228] ss:$16 sps:$4 sm:$0xff]   ;;  %v2729_v21 = vld [vmem:[#allocation5 + $0x26c] ss:$16 sps:$4 sm:$0xff]  }
  0x97   :  { %1355 = vmatprep.subr.bf16.mxu0 %v2642_v20  ;;  %v2724_v20 = vld [vmem:[#allocation5 + $0x248] ss:$16 sps:$4 sm:$0xff]  }
  0x99   :  { %1397 = vmatpush1.bf16.msra.mxu1 %v2643_v23  ;;  %v2732_v23 = vld [vmem:[#allocation5 + $0x28c] ss:$16 sps:$4 sm:$0xff]  }
  0x9a   :  { %1356 = vmatpush1.bf16.msra.mxu0 %v2640_v22  ;;  %1398 = vmatprep.subr.bf16.mxu1 %v2651_v25  ;;  %v2727_v22 = vld [vmem:[#allocation5 + $0x268] ss:$16 sps:$4 sm:$0xff]   ;;  %v2735_v25 = vld [vmem:[#allocation5 + $0x2ac] ss:$16 sps:$4 sm:$0xff]  }
  0x9b   :  { %1357 = vmatprep.subr.bf16.mxu0 %v2648_v24  ;;  %v2730_v24 = vld [vmem:[#allocation5 + $0x288] ss:$16 sps:$4 sm:$0xff]  }
  0x9d   :  { %1399 = vmatpush1.bf16.msra.mxu1 %v2649_v27  ;;  %v2738_v27 = vld [vmem:[#allocation5 + $0x2cc] ss:$16 sps:$4 sm:$0xff]  }
  0x9e   :  { %1358 = vmatpush1.bf16.msra.mxu0 %v2646_v26  ;;  %1400 = vmatprep.subr.bf16.mxu1 %v2657_v29  ;;  %v2733_v26 = vld [vmem:[#allocation5 + $0x2a8] ss:$16 sps:$4 sm:$0xff]   ;;  %v2816_v29 = vld [vmem:[#allocation7 + $0x4] ss:$8 sps:$4 sm:$0xff]  }
  0x9f   :  { %1359 = vmatprep.subr.bf16.mxu0 %v2654_v28  ;;  %v2814_v28 = vld [vmem:[#allocation7] ss:$8 sps:$4 sm:$0xff]  }
  0xa1   :  { %1401 = vmatpush1.bf16.msra.mxu1 %v2655_v31  ;;  %v2739_v31 = vld [vmem:[#allocation5 + $0x2e8] ss:$16 sps:$4 sm:$0xff]  }
  0xa2   :  { %1360 = vmatpush1.bf16.msra.mxu0 %v2652_v30  ;;  %1402 = vmatprep.subr.bf16.mxu1 %v2663_v33  ;;  %v2819_v30 = vld [vmem:[#allocation7 + $0x14] ss:$8 sps:$4 sm:$0xff]  }
  0xa3   :  { %1361 = vmatprep.subr.bf16.mxu0 %v2660_v32  ;;  %v2817_v32 = vld [vmem:[#allocation7 + $0x10] ss:$8 sps:$4 sm:$0xff]   ;;  %v2744_v33 = vld [vmem:[#allocation5 + $0x30c] ss:$16 sps:$4 sm:$0xff]  }
  0xa5   :  { %1403 = vmatpush1.bf16.msra.mxu1 %v2661_v37  ;;  %v2820_v37 = vld [vmem:[#allocation7 + $0x20] ss:$8 sps:$4 sm:$0xff]  }
  0xa6   :  { %1362 = vmatpush1.bf16.msra.mxu0 %v2658_v36  ;;  %1404 = vmatprep.subr.bf16.mxu1 %v2669_v39  ;;  %v2742_v36 = vld [vmem:[#allocation5 + $0x308] ss:$16 sps:$4 sm:$0xff]   ;;  %v2825_v39 = vld [vmem:[#allocation7 + $0x34] ss:$8 sps:$4 sm:$0xff]  }
  0xa7   :  { %1363 = vmatprep.subr.bf16.mxu0 %v2666_v38  ;;  %v2747_v38 = vld [vmem:[#allocation5 + $0x32c] ss:$16 sps:$4 sm:$0xff]  }
  0xa9   :  { %1405 = vmatpush1.bf16.msra.mxu1 %v2667_v41  ;;  %v2823_v41 = vld [vmem:[#allocation7 + $0x30] ss:$8 sps:$4 sm:$0xff]  }
  0xaa   :  { %1364 = vmatpush1.bf16.msra.mxu0 %v2664_v40  ;;  %1406 = vmatprep.subr.bf16.mxu1 %v2675_v43  ;;  %v2745_v40 = vld [vmem:[#allocation5 + $0x328] ss:$16 sps:$4 sm:$0xff]   ;;  %v2828_v43 = vld [vmem:[#allocation7 + $0x44] ss:$8 sps:$4 sm:$0xff]  }
  0xab   :  { %1365 = vmatprep.subr.bf16.mxu0 %v2672_v42  ;;  %v2750_v42 = vld [vmem:[#allocation5 + $0x34c] ss:$16 sps:$4 sm:$0xff]  }
  0xad   :  { %1407 = vmatpush1.bf16.msra.mxu1 %v2673_v45  ;;  %v2826_v45 = vld [vmem:[#allocation7 + $0x40] ss:$8 sps:$4 sm:$0xff]  }
  0xae   :  { %1366 = vmatpush1.bf16.msra.mxu0 %v2670_v44  ;;  %1408 = vmatprep.subr.bf16.mxu1 %v2681_v47  ;;  %v2748_v44 = vld [vmem:[#allocation5 + $0x348] ss:$16 sps:$4 sm:$0xff]   ;;  %v2831_v47 = vld [vmem:[#allocation7 + $0x54] ss:$8 sps:$4 sm:$0xff]  }
  0xaf   :  { %1367 = vmatprep.subr.bf16.mxu0 %v2678_v46  ;;  %v2753_v46 = vld [vmem:[#allocation5 + $0x36c] ss:$16 sps:$4 sm:$0xff]  }
  0xb1   :  { %1409 = vmatpush1.bf16.msra.mxu1 %v2679_v49  ;;  %v2829_v49 = vld [vmem:[#allocation7 + $0x50] ss:$8 sps:$4 sm:$0xff]  }
  0xb2   :  { %1368 = vmatpush1.bf16.msra.mxu0 %v2676_v48  ;;  %1410 = vmatprep.subr.bf16.mxu1 %v2687_v51  ;;  %v2751_v48 = vld [vmem:[#allocation5 + $0x368] ss:$16 sps:$4 sm:$0xff]   ;;  %v2834_v51 = vld [vmem:[#allocation7 + $0x64] ss:$8 sps:$4 sm:$0xff]  }
  0xb3   :  { %1369 = vmatprep.subr.bf16.mxu0 %v2684_v50  ;;  %v2756_v50 = vld [vmem:[#allocation5 + $0x38c] ss:$16 sps:$4 sm:$0xff]  }
  0xb5   :  { %1411 = vmatpush1.bf16.msra.mxu1 %v2685_v54  ;;  %v2832_v54 = vld [vmem:[#allocation7 + $0x60] ss:$8 sps:$4 sm:$0xff]  }
  0xb6   :  { %1370 = vmatpush1.bf16.msra.mxu0 %v2682_v53  ;;  %1412 = vmatprep.subr.bf16.mxu1 %v2693_v56  ;;  %v2754_v53 = vld [vmem:[#allocation5 + $0x388] ss:$16 sps:$4 sm:$0xff]   ;;  %v2837_v56 = vld [vmem:[#allocation7 + $0x74] ss:$8 sps:$4 sm:$0xff]  }
  0xb7   :  { %1371 = vmatprep.subr.bf16.mxu0 %v2690_v55  ;;  %v2759_v55 = vld [vmem:[#allocation5 + $0x3ac] ss:$16 sps:$4 sm:$0xff]  }
  0xb9   :  { %1413 = vmatpush1.bf16.msra.mxu1 %v2691_v58  ;;  %v2835_v58 = vld [vmem:[#allocation7 + $0x70] ss:$8 sps:$4 sm:$0xff]  }
  0xba   :  { %1372 = vmatpush1.bf16.msra.mxu0 %v2688_v57  ;;  %1414 = vmatprep.subr.bf16.mxu1 %v2699_v60  ;;  %v2757_v57 = vld [vmem:[#allocation5 + $0x3a8] ss:$16 sps:$4 sm:$0xff]   ;;  %v2840_v60 = vld [vmem:[#allocation7 + $0x84] ss:$8 sps:$4 sm:$0xff]  }
  0xbb   :  { %1373 = vmatprep.subr.bf16.mxu0 %v2696_v59  ;;  %v2762_v59 = vld [vmem:[#allocation5 + $0x3cc] ss:$16 sps:$4 sm:$0xff]  }
  0xbd   :  { %1415 = vmatpush1.bf16.msra.mxu1 %v2697_v62  ;;  %v2838_v62 = vld [vmem:[#allocation7 + $0x80] ss:$8 sps:$4 sm:$0xff]  }
  0xbe   :  { %1374 = vmatpush1.bf16.msra.mxu0 %v2694_v61  ;;  %1416 = vmatprep.subr.bf16.mxu1 %v2705_v0  ;;  %v2760_v61 = vld [vmem:[#allocation5 + $0x3c8] ss:$16 sps:$4 sm:$0xff]   ;;  %v2843_v0 = vld [vmem:[#allocation7 + $0x94] ss:$8 sps:$4 sm:$0xff]  }
  0xbf   :  { %1375 = vmatprep.subr.bf16.mxu0 %v2702_v63  ;;  %v2765_v63 = vld [vmem:[#allocation5 + $0x3ec] ss:$16 sps:$4 sm:$0xff]  }
  0xc1   :  { %1417 = vmatpush1.bf16.msra.mxu1 %v2703_v2  ;;  %v2841_v2 = vld [vmem:[#allocation7 + $0x90] ss:$8 sps:$4 sm:$0xff]  }
  0xc2   :  { %1376 = vmatpush1.bf16.msra.mxu0 %v2700_v1  ;;  %1418 = vmatprep.subr.bf16.mxu1 %v2711_v4  ;;  %v2763_v1 = vld [vmem:[#allocation5 + $0x3e8] ss:$16 sps:$4 sm:$0xff]   ;;  %v2846_v4 = vld [vmem:[#allocation7 + $0xa4] ss:$8 sps:$4 sm:$0xff]  }
  0xc3   :  { %1377 = vmatprep.subr.bf16.mxu0 %v2708_v3  ;;  %v2768_v3 = vld [vmem:[#allocation5 + $0x40c] ss:$16 sps:$4 sm:$0xff]  }
  0xc5   :  { %1419 = vmatpush1.bf16.msra.mxu1 %v2709_v6  ;;  %v2771_v6 = vld [vmem:[#allocation5 + $0x42c] ss:$16 sps:$4 sm:$0xff]  }
  0xc6   :  { %1378 = vmatpush1.bf16.msra.mxu0 %v2706_v5  ;;  %1420 = vmatprep.subr.bf16.mxu1 %v2717_v9  ;;  %v2766_v5 = vld [vmem:[#allocation5 + $0x408] ss:$16 sps:$4 sm:$0xff]   ;;  %v2849_v9 = vld [vmem:[#allocation7 + $0xb4] ss:$8 sps:$4 sm:$0xff]  }
  0xc7   :  { %1379 = vmatprep.subr.bf16.mxu0 %v2714_v7  ;;  %v2844_v7 = vld [vmem:[#allocation7 + $0xa0] ss:$8 sps:$4 sm:$0xff]  }
  0xc9   :  { %1421 = vmatpush1.bf16.msra.mxu1 %v2715_v12  ;;  %v2774_v12 = vld [vmem:[#allocation5 + $0x44c] ss:$16 sps:$4 sm:$0xff]  }
  0xca   :  { %1380 = vmatpush1.bf16.msra.mxu0 %v2712_v10  ;;  %1431 = vmatprep.subr.bf16.mxu1 %v2720_v14  ;;  %v2769_v10 = vld [vmem:[#allocation5 + $0x428] ss:$16 sps:$4 sm:$0xff]   ;;  %v2852_v14 = vld [vmem:[#allocation7 + $0xc4] ss:$8 sps:$4 sm:$0xff]  }
  0xcb   :  { %1917 = vmatprep.subr.bf16.mxu0 %v2816_v29  ;;  %v2787_v29 = vld [vmem:[#allocation5 + $0x4e8] ss:$16 sps:$4 sm:$0xff]  }
  0xcc   :  { %1423 = vmatmul.mubr.bf16.vlgmr.msra.gmra.mrb[4].mxu1 %v3149_v8  ;;  %v2736_v8 = vld [vmem:[#allocation5 + $0x2c8] ss:$16 sps:$4 sm:$0xff]  }
  0xcd   :  { %1382 = vmatmul.mubr.bf16.vlgmr.msra.gmra.mrb[0].mxu0 %v3159_v15  ;;  %1432 = vmatpush1.bf16.msra.mxu1 %v2718_v16  ;;  %v2772_v16 = vld [vmem:[#allocation5 + $0x448] ss:$16 sps:$4 sm:$0xff]  }
  0xce   :  { %1463 = vmatprep.mubr.bf16.mxu1 %v3145_v52  ;;  %1433 = vmatprep.subr.bf16.mxu1 %v2723_v17  ;;  %v2741_v52 = vld [vmem:[#allocation5 + $0x2ec] ss:$16 sps:$4 sm:$0xff]  }
  0xcf   :  { %1918 = vmatpush1.bf16.msra.mxu0 %v2814_v28  ;;  %v2777_v17 = vld [vmem:[#allocation5 + $0x46c] ss:$16 sps:$4 sm:$0xff]   ;;  %v2859_v28 = vld [vmem:[#allocation7 + $0xf0] ss:$8 sps:$4 sm:$0xff]  }
  0xd0   :  { %1919 = vmatprep.subr.bf16.mxu0 %v2819_v30  ;;  %v2792_v30 = vld [vmem:[#allocation5 + $0x50c] ss:$16 sps:$4 sm:$0xff]  }
  0xd1   :  { %1434 = vmatpush1.bf16.msra.mxu1 %v2721_v18  ;;  %v2850_v18 = vld [vmem:[#allocation7 + $0xc0] ss:$8 sps:$4 sm:$0xff]  }
  0xd2   :  { %1435 = vmatprep.subr.bf16.mxu1 %v2726_v19  ;;  %v2855_v19 = vld [vmem:[#allocation7 + $0xd4] ss:$8 sps:$4 sm:$0xff]  }
  0xd3   :  { %1920 = vmatpush1.bf16.msra.mxu0 %v2817_v32  ;;  %v2790_v32 = vld [vmem:[#allocation5 + $0x508] ss:$16 sps:$4 sm:$0xff]  }
  0xd4   :  { %1921 = vmatprep.subr.bf16.mxu0 %v2822_v34  ;;  %v2793_v34 = vld [vmem:[#allocation5 + $0x528] ss:$16 sps:$4 sm:$0xff]  }
  0xd5   :  { %1436 = vmatpush1.bf16.msra.mxu1 %v2724_v20  ;;  %v2780_v20 = vld [vmem:[#allocation5 + $0x48c] ss:$16 sps:$4 sm:$0xff]  }
  0xd6   :  { %1437 = vmatprep.subr.bf16.mxu1 %v2729_v21  ;;  %v2778_v21 = vld [vmem:[#allocation5 + $0x488] ss:$16 sps:$4 sm:$0xff]  }
  0xd7   :  { %1922 = vmatpush1.bf16.msra.mxu0 %v2820_v37  ;;  %v2796_v37 = vld [vmem:[#allocation5 + $0x548] ss:$16 sps:$4 sm:$0xff]  }
  0xd8   :  { %1923 = vmatprep.subr.bf16.mxu0 %v2825_v39  ;;  %v2799_v39 = vld [vmem:[#allocation5 + $0x568] ss:$16 sps:$4 sm:$0xff]  }
  0xd9   :  { %1438 = vmatpush1.bf16.msra.mxu1 %v2727_v22  ;;  %v2783_v22 = vld [vmem:[#allocation5 + $0x4ac] ss:$16 sps:$4 sm:$0xff]  }
  0xda   :  { %1439 = vmatprep.subr.bf16.mxu1 %v2732_v23  ;;  %v2781_v23 = vld [vmem:[#allocation5 + $0x4a8] ss:$16 sps:$4 sm:$0xff]  }
  0xdb   :  { %1924 = vmatpush1.bf16.msra.mxu0 %v2823_v41  ;;  %v2802_v41 = vld [vmem:[#allocation5 + $0x588] ss:$16 sps:$4 sm:$0xff]  }
  0xdc   :  { %1925 = vmatprep.subr.bf16.mxu0 %v2828_v43  ;;  %v2805_v43 = vld [vmem:[#allocation5 + $0x5a8] ss:$16 sps:$4 sm:$0xff]  }
  0xdd   :  { %1440 = vmatpush1.bf16.msra.mxu1 %v2730_v24  ;;  %v2786_v24 = vld [vmem:[#allocation5 + $0x4cc] ss:$16 sps:$4 sm:$0xff]  }
  0xde   :  { %1441 = vmatprep.subr.bf16.mxu1 %v2735_v25  ;;  %v2858_v25 = vld [vmem:[#allocation7 + $0xe4] ss:$8 sps:$4 sm:$0xff]  }
  0xdf   :  { %1926 = vmatpush1.bf16.msra.mxu0 %v2826_v45  ;;  %v2808_v45 = vld [vmem:[#allocation5 + $0x5c8] ss:$16 sps:$4 sm:$0xff]  }
  0xe0   :  { %1927 = vmatprep.subr.bf16.mxu0 %v2831_v47  ;;  %v2811_v47 = vld [vmem:[#allocation5 + $0x5e8] ss:$16 sps:$4 sm:$0xff]  }
  0xe1   :  { %1442 = vmatpush1.bf16.msra.mxu1 %v2733_v26  ;;  %v2856_v26 = vld [vmem:[#allocation7 + $0xe0] ss:$8 sps:$4 sm:$0xff]  }
  0xe2   :  { %1443 = vmatprep.subr.bf16.mxu1 %v2738_v27  ;;  %v2784_v27 = vld [vmem:[#allocation5 + $0x4c8] ss:$16 sps:$4 sm:$0xff]  }
  0xe3   :  { %1928 = vmatpush1.bf16.msra.mxu0 %v2829_v49 }
  0xe4   :  { %1929 = vmatprep.subr.bf16.mxu0 %v2834_v51 }
  0xe5   :  { %1444 = vmatpush1.bf16.msra.mxu1 %v2736_v8  ;;  %v2789_v8 = vld [vmem:[#allocation5 + $0x4ec] ss:$16 sps:$4 sm:$0xff]  }
  0xe6   :  { %1445 = vmatprep.subr.bf16.mxu1 %v2741_v52  ;;  %v2861_v52 = vld [vmem:[#allocation7 + $0xf4] ss:$8 sps:$4 sm:$0xff]  }
  0xe7   :  { %1930 = vmatpush1.bf16.msra.mxu0 %v2832_v54 }
  0xe8   :  { %1931 = vmatprep.subr.bf16.mxu0 %v2837_v56  ;;  %v3173_v56 = vld [vmem:[%s3210_s2] sm:$0xf] }
  0xe9   :  { %1446 = vmatpush1.bf16.msra.mxu1 %v2739_v31  ;;  %v2864_v31 = vld [vmem:[#allocation7 + $0x104] ss:$8 sps:$4 sm:$0xff]  }
  0xea   :  { %1447 = vmatprep.subr.bf16.mxu1 %v2744_v33  ;;  %v2795_v33 = vld [vmem:[#allocation5 + $0x52c] ss:$16 sps:$4 sm:$0xff]  }
  0xeb   :  { %1932 = vmatpush1.bf16.msra.mxu0 %v2835_v58 }
  0xec   :  { %1933 = vmatprep.subr.bf16.mxu0 %v2840_v60 }
  0xed   :  { %1448 = vmatpush1.bf16.msra.mxu1 %v2742_v36  ;;  %v2798_v36 = vld [vmem:[#allocation5 + $0x54c] ss:$16 sps:$4 sm:$0xff]  }
  0xee   :  { %1449 = vmatprep.subr.bf16.mxu1 %v2747_v38  ;;  %v2801_v38 = vld [vmem:[#allocation5 + $0x56c] ss:$16 sps:$4 sm:$0xff]  }
  0xef   :  { %1934 = vmatpush1.bf16.msra.mxu0 %v2838_v62 }
  0xf0   :  { %1935 = vmatprep.subr.bf16.mxu0 %v2843_v0 }
  0xf1   :  { %1450 = vmatpush1.bf16.msra.mxu1 %v2745_v40  ;;  %v2804_v40 = vld [vmem:[#allocation5 + $0x58c] ss:$16 sps:$4 sm:$0xff]  }
  0xf2   :  { %1451 = vmatprep.subr.bf16.mxu1 %v2750_v42  ;;  %v2807_v42 = vld [vmem:[#allocation5 + $0x5ac] ss:$16 sps:$4 sm:$0xff]  }
  0xf3   :  { %1936 = vmatpush1.bf16.msra.mxu0 %v2841_v2 }
  0xf4   :  { %1937 = vmatprep.subr.bf16.mxu0 %v2846_v4 }
  0xf5   :  { %1452 = vmatpush1.bf16.msra.mxu1 %v2748_v44  ;;  %v2810_v44 = vld [vmem:[#allocation5 + $0x5cc] ss:$16 sps:$4 sm:$0xff]  }
  0xf6   :  { %1453 = vmatprep.subr.bf16.mxu1 %v2753_v46  ;;  %v2813_v46 = vld [vmem:[#allocation5 + $0x5ec] ss:$16 sps:$4 sm:$0xff]  }
  0xf7   :  { %1938 = vmatpush1.bf16.msra.mxu0 %v2844_v7 }
  0xf8   :  { %1939 = vmatprep.subr.bf16.mxu0 %v2849_v9  ;;  %v2867_v9 = vld [vmem:[#allocation7 + $0x114] ss:$8 sps:$4 sm:$0xff]  }
  0xf9   :  { %1454 = vmatpush1.bf16.msra.mxu1 %v2751_v48 }
  0xfa   :  { %1455 = vmatprep.subr.bf16.mxu1 %v2756_v50 }
  0xfb   :  { %1940 = vmatpush1.bf16.msra.mxu0 %v2847_v13  ;;  %v2912_v13 = vld [vmem:[#allocation8 + $0x48] sm:$0xff]  }
  0xfc   :  { %1941 = vmatprep.subr.bf16.mxu0 %v2852_v14  ;;  %v2865_v14 = vld [vmem:[#allocation7 + $0x110] ss:$8 sps:$4 sm:$0xff]  }
  0xfd   :  { %1456 = vmatpush1.bf16.msra.mxu1 %v2754_v53  ;;  %v287_v53 = vlaneseq }
  0xfe   :  { %1457 = vmatprep.subr.bf16.mxu1 %v2759_v55 }
  0xff   :  { %1942 = vmatpush1.bf16.msra.mxu0 %v2850_v18  ;;  %v3167_v54 = vshrl.u32 %v287_v53, 7  ;;  %v2914_v18 = vld [vmem:[#allocation8 + $0x50] sm:$0xff]  }
 0x100   :  { %1943 = vmatprep.subr.bf16.mxu0 %v2855_v19  ;;  %v2868_v19 = vld [vmem:[#allocation7 + $0x120] ss:$8 sps:$4 sm:$0xff]  }
 0x101   :  { %1458 = vmatpush1.bf16.msra.mxu1 %v2757_v57  ;;  %v289_v55 = vsub.s32 0, %v3167_v54  ;;  %v293_v57 = vsub.s32 1, %v3167_v54 }
 0x102   :  { %1459 = vmatprep.subr.bf16.mxu1 %v2762_v59 }
 0x103   :  { %v294_v58 = vrot.slane %v3173_v56, %v293_v57 }
 0x105   :  { %1460 = vmatpush1.bf16.msra.mxu1 %v2760_v61 }
 0x106   :  { %1461 = vmatprep.subr.bf16.mxu1 %v2765_v63 }
 0x109   :  { %1462 = vmatpush1.bf16.msra.mxu1 %v2763_v1 }
 0x10a   :  { %1472 = vmatprep.subr.bf16.mxu1 %v2768_v3 }
 0x10c   :  { %1464 = vmatmul.mubr.bf16.vlgmr.msra.gmra.mrb[4].mxu1 %v3151_v11  ;;  %v2775_v11 = vld [vmem:[#allocation5 + $0x468] ss:$16 sps:$4 sm:$0xff]  }
 0x10d   :  { %1473 = vmatpush1.bf16.msra.mxu1 %v2766_v5  ;;  %1504 = vmatprep.mubr.bf16.mxu1 %v3156_v35  ;;  %v2853_v35 = vld [vmem:[#allocation7 + $0xd0] ss:$8 sps:$4 sm:$0xff]  }
 0x10e   :  { %1474 = vmatprep.subr.bf16.mxu1 %v2771_v6  ;;  %1944 = vmatpush1.bf16.msra.mxu0 %v2853_v35  ;;  %v2862_v6 = vld [vmem:[#allocation7 + $0x100] ss:$8 sps:$4 sm:$0xff]   ;;  %v2916_v35 = vld [vmem:[#allocation8 + $0x58] sm:$0xff]  }
 0x10f   :  { %1945 = vmatprep.subr.bf16.mxu0 %v2858_v25  ;;  %v2874_v25 = vld [vmem:[#allocation7 + $0x140] ss:$8 sps:$4 sm:$0xff]  }
 0x111   :  { %1475 = vmatpush1.bf16.msra.mxu1 %v2769_v10  ;;  %v2910_v10 = vld [vmem:[#allocation8 + $0x40] sm:$0xff]  }
 0x112   :  { %1476 = vmatprep.subr.bf16.mxu1 %v2774_v12  ;;  %1946 = vmatpush1.bf16.msra.mxu0 %v2856_v26  ;;  %v2911_v12 = vld [vmem:[#allocation8] sm:$0xff]   ;;  %v2879_v26 = vld [vmem:[#allocation7 + $0x154] ss:$8 sps:$4 sm:$0xff]  }
 0x113   :  { %1947 = vmatprep.subr.bf16.mxu0 %v2861_v52  ;;  %v2877_v52 = vld [vmem:[#allocation7 + $0x150] ss:$8 sps:$4 sm:$0xff]  }
 0x115   :  { %1477 = vmatpush1.bf16.msra.mxu1 %v2772_v16  ;;  %v2870_v16 = vld [vmem:[#allocation7 + $0x124] ss:$8 sps:$4 sm:$0xff]  }
 0x116   :  { %1478 = vmatprep.subr.bf16.mxu1 %v2777_v17  ;;  %1948 = vmatpush1.bf16.msra.mxu0 %v2859_v28  ;;  %v2913_v17 = vld [vmem:[#allocation8 + $0x8] sm:$0xff]  }
 0x117   :  { %1958 = vmatprep.subr.bf16.mxu0 %v2864_v31  ;;  %v2882_v28 = vld [vmem:[#allocation7 + $0x164] ss:$8 sps:$4 sm:$0xff]   ;;  %v2885_v31 = vld [vmem:[#allocation7 + $0x174] ss:$8 sps:$4 sm:$0xff]  }
 0x119   :  { %1479 = vmatpush1.bf16.msra.mxu1 %v2775_v11  ;;  %v2873_v11 = vld [vmem:[#allocation7 + $0x134] ss:$8 sps:$4 sm:$0xff]  }
 0x11a   :  { %1480 = vmatprep.subr.bf16.mxu1 %v2780_v20  ;;  %v2915_v20 = vld [vmem:[#allocation8 + $0x10] sm:$0xff]  }
 0x11d   :  { %1481 = vmatpush1.bf16.msra.mxu1 %v2778_v21  ;;  %v2871_v21 = vld [vmem:[#allocation7 + $0x130] ss:$8 sps:$4 sm:$0xff]  }
 0x11e   :  { %1482 = vmatprep.subr.bf16.mxu1 %v2783_v22  ;;  %v2876_v22 = vld [vmem:[#allocation7 + $0x144] ss:$8 sps:$4 sm:$0xff]  }
 0x121   :  { %1483 = vmatpush1.bf16.msra.mxu1 %v2781_v23  ;;  %v2917_v23 = vld [vmem:[#allocation8 + $0x18] sm:$0xff]  }
 0x122   :  { %1484 = vmatprep.subr.bf16.mxu1 %v2786_v24  ;;  %v2918_v24 = vld [vmem:[#allocation8 + $0x60] sm:$0xff]  }
 0x125   :  { %1485 = vmatpush1.bf16.msra.mxu1 %v2784_v27  ;;  %v2919_v27 = vld [vmem:[#allocation8 + $0x20] sm:$0xff]  }
 0x126   :  { %1486 = vmatprep.subr.bf16.mxu1 %v2789_v8  ;;  %v2920_v8 = vld [vmem:[#allocation8 + $0x68] sm:$0xff]  }
 0x129   :  { %1487 = vmatpush1.bf16.msra.mxu1 %v2787_v29  ;;  %v2921_v29 = vld [vmem:[#allocation8 + $0x28] sm:$0xff]  }
 0x12a   :  { %1488 = vmatprep.subr.bf16.mxu1 %v2792_v30  ;;  %v2880_v30 = vld [vmem:[#allocation7 + $0x160] ss:$8 sps:$4 sm:$0xff]  }
 0x12d   :  { %1489 = vmatpush1.bf16.msra.mxu1 %v2790_v32  ;;  %v2883_v32 = vld [vmem:[#allocation7 + $0x170] ss:$8 sps:$4 sm:$0xff]  }
 0x12e   :  { %1490 = vmatprep.subr.bf16.mxu1 %v2795_v33  ;;  %v2888_v33 = vld [vmem:[#allocation7 + $0x184] ss:$8 sps:$4 sm:$0xff]  }
 0x131   :  { %1491 = vmatpush1.bf16.msra.mxu1 %v2793_v34  ;;  %v2886_v34 = vld [vmem:[#allocation7 + $0x180] ss:$8 sps:$4 sm:$0xff]  }
 0x132   :  { %1492 = vmatprep.subr.bf16.mxu1 %v2798_v36  ;;  %v2891_v36 = vld [vmem:[#allocation7 + $0x194] ss:$8 sps:$4 sm:$0xff]  }
 0x135   :  { %1493 = vmatpush1.bf16.msra.mxu1 %v2796_v37  ;;  %v2889_v37 = vld [vmem:[#allocation7 + $0x190] ss:$8 sps:$4 sm:$0xff]  }
 0x136   :  { %1494 = vmatprep.subr.bf16.mxu1 %v2801_v38  ;;  %v2894_v38 = vld [vmem:[#allocation7 + $0x1a4] ss:$8 sps:$4 sm:$0xff]  }
 0x139   :  { %1495 = vmatpush1.bf16.msra.mxu1 %v2799_v39  ;;  %v2892_v39 = vld [vmem:[#allocation7 + $0x1a0] ss:$8 sps:$4 sm:$0xff]  }
 0x13a   :  { %1496 = vmatprep.subr.bf16.mxu1 %v2804_v40  ;;  %v2897_v40 = vld [vmem:[#allocation7 + $0x1b4] ss:$8 sps:$4 sm:$0xff]  }
 0x13d   :  { %1497 = vmatpush1.bf16.msra.mxu1 %v2802_v41  ;;  %v2895_v41 = vld [vmem:[#allocation7 + $0x1b0] ss:$8 sps:$4 sm:$0xff]  }
 0x13e   :  { %1498 = vmatprep.subr.bf16.mxu1 %v2807_v42  ;;  %v2900_v42 = vld [vmem:[#allocation7 + $0x1c4] ss:$8 sps:$4 sm:$0xff]  }
 0x141   :  { %1499 = vmatpush1.bf16.msra.mxu1 %v2805_v43  ;;  %v2898_v43 = vld [vmem:[#allocation7 + $0x1c0] ss:$8 sps:$4 sm:$0xff]  }
 0x142   :  { %1500 = vmatprep.subr.bf16.mxu1 %v2810_v44  ;;  %v2903_v44 = vld [vmem:[#allocation7 + $0x1d4] ss:$8 sps:$4 sm:$0xff]  }
 0x145   :  { %1501 = vmatpush1.bf16.msra.mxu1 %v2808_v45  ;;  %v2901_v45 = vld [vmem:[#allocation7 + $0x1d0] ss:$8 sps:$4 sm:$0xff]  }
 0x146   :  { %1502 = vmatprep.subr.bf16.mxu1 %v2813_v46  ;;  %v2906_v46 = vld [vmem:[#allocation7 + $0x1e4] ss:$8 sps:$4 sm:$0xff]  }
 0x149   :  { %1503 = vmatpush1.bf16.msra.mxu1 %v2811_v47  ;;  %v2904_v47 = vld [vmem:[#allocation7 + $0x1e0] ss:$8 sps:$4 sm:$0xff]  }
 0x14a   :  { %2469 = vmatprep.subr.bf16.mxu1 %v2910_v10 }
 0x14c   :  { %1505 = vmatmul.mubr.bf16.vlgmr.msra.gmra.mrb[4].mxu1 %v3159_v15  ;;  %v290_v15 = vrot.slane %v3173_v56, %v289_v55 }
 0x14d   :  { %2470 = vmatpush3.bf16.msra.mxu1 %v2911_v12 }
 0x14e   :  { %2471 = vmatprep.subr.bf16.mxu1 %v2912_v13 }
 0x151   :  { %2472 = vmatpush3.bf16.msra.mxu1 %v2913_v17 }
 0x152   :  { %2473 = vmatprep.subr.bf16.mxu1 %v2914_v18 }
 0x155   :  { %2474 = vmatpush3.bf16.msra.mxu1 %v2915_v20 }
 0x156   :  { %2475 = vmatprep.subr.bf16.mxu1 %v2916_v35 }
 0x159   :  { %2476 = vmatpush3.bf16.msra.mxu1 %v2917_v23 }
 0x15a   :  { %2477 = vmatprep.subr.bf16.mxu1 %v2918_v24 }
 0x15d   :  { %2478 = vmatpush3.bf16.msra.mxu1 %v2919_v27 }
 0x15e   :  { %2479 = vmatprep.subr.bf16.mxu1 %v2920_v8 }
 0x15f   :  { %v1301_v48 = vpop.f32.mrb[0].mxu1 }
 0x160   :  { %v1303_v49 = vpop.f32.mrb[1].mxu1  ;;  %v1302_v59 = vadd.f32 %v1301_v48, %v290_v15  ;;  %v2909_v48 = vld [vmem:[#allocation7 + $0x1f4] ss:$8 sps:$4 sm:$0xff]  }
 0x161   :  { %v1305_v50 = vpop.f32.mrb[2].mxu1  ;;  %v1304_v60 = vadd.f32 %v1303_v49, %v294_v58  ;;  %2480 = vmatpush3.bf16.msra.mxu1 %v2921_v29  ;;  %v2907_v49 = vld [vmem:[#allocation7 + $0x1f0] ss:$8 sps:$4 sm:$0xff]  }
 0x162   :  { %v1306_v51 = vpop.f32.mrb[3].mxu1  ;;  %v297_v50 = vsub.s32 2, %v3167_v54 }
 0x163   :  { %v301_v51 = vsub.s32 3, %v3167_v54 }
 0x164   :  { %v298_v53 = vrot.slane %v3173_v56, %v297_v50 }
 0x165   :  { %v302_v15 = vrot.slane %v3173_v56, %v301_v51  ;;  %v1585_v56 = vld [vmem:[%s3212_s4] sm:$0x3] }
 0x166   :  { %v1594_v10 = vrot.slane %v1585_v56, %v293_v57 }
 0x1a0   :  { %v1383_v61 = vpop.f32.mrb[0].mxu0 }
 0x1a1   :  { %v2492_v62 = vadd.f32 %v1383_v61, %v1302_v59  ;;  %v1385_v63 = vpop.f32.mrb[1].mxu0 }
 0x1a2   :  { %v2494_v0 = vadd.f32 %v1385_v63, %v1304_v60  ;;  %v1387_v1 = vpop.f32.mrb[2].mxu0 }
 0x1a3   :  { %v1513_v2 = vmax.f32 %v2492_v62, 0.0  ;;  %v1388_v3 = vpop.f32.mrb[3].mxu0 }
 0x1a4   :  { %v1514_v4 = vmax.f32 %v2494_v0, 0.0 }
 0x1a5   :  { %v1517_v7 = vpack.c.bf16 %v1513_v2, %v1513_v2 }
 0x1a6   :  { %v1518_v5 = vpack.c.bf16 %v1514_v4, %v1514_v4  ;;  %v2922_v4 = vld [vmem:[#allocation8 + $0x70] sm:$0xff]  }
 0x1a7   :  { %2481 = vmatprep.subr.bf16.mxu1 %v2922_v4 }
 0x1a8   :  { %1949 = vmatprep.mubr.bf16.mxu0 %v1518_v5  ;;  %v2923_v5 = vld [vmem:[#allocation8 + $0x30] sm:$0xff]  }
 0x1a9   :  { %1950 = vmatmul.mubr.bf16.vlgmr.msra.gmra.mrb[4].mxu0 %v1517_v7  ;;  %2482 = vmatpush3.bf16.msra.mxu1 %v2923_v5  ;;  %v2925_v7 = vld [vmem:[#allocation8 + $0x38] sm:$0xff]  }
 0x1aa   :  { %1959 = vmatpush1.bf16.msra.mxu0 %v2862_v6  ;;  %v2924_v6 = vld [vmem:[#allocation8 + $0x78] sm:$0xff]  }
 0x1ab   :  { %1960 = vmatprep.subr.bf16.mxu0 %v2867_v9  ;;  %2483 = vmatprep.subr.bf16.mxu1 %v2924_v6  ;;  %v1590_v9 = vrot.slane %v1585_v56, %v289_v55  ;;  %v2452_v55 = vld [vmem:[%s3214_s6] ss:$0 sm:$0xff] }
 0x1ad   :  { %2484 = vmatpush3.bf16.msra.mxu1 %v2925_v7 }
 0x1ae   :  { %1961 = vmatpush1.bf16.msra.mxu0 %v2865_v14 }
 0x1af   :  { %1962 = vmatprep.subr.bf16.mxu0 %v2870_v16 }
 0x1b2   :  { %1963 = vmatpush1.bf16.msra.mxu0 %v2868_v19 }
 0x1b3   :  { %1964 = vmatprep.subr.bf16.mxu0 %v2873_v11 }
 0x1b6   :  { %1965 = vmatpush1.bf16.msra.mxu0 %v2871_v21 }
 0x1b7   :  { %1966 = vmatprep.subr.bf16.mxu0 %v2876_v22 }
 0x1ba   :  { %1967 = vmatpush1.bf16.msra.mxu0 %v2874_v25 }
 0x1bb   :  { %1968 = vmatprep.subr.bf16.mxu0 %v2879_v26 }
 0x1be   :  { %1969 = vmatpush1.bf16.msra.mxu0 %v2877_v52 }
 0x1bf   :  { %1970 = vmatprep.subr.bf16.mxu0 %v2882_v28 }
 0x1c2   :  { %1971 = vmatpush1.bf16.msra.mxu0 %v2880_v30 }
 0x1c3   :  { %1972 = vmatprep.subr.bf16.mxu0 %v2885_v31 }
 0x1c6   :  { %1973 = vmatpush1.bf16.msra.mxu0 %v2883_v32 }
 0x1c7   :  { %1974 = vmatprep.subr.bf16.mxu0 %v2888_v33 }
 0x1ca   :  { %1975 = vmatpush1.bf16.msra.mxu0 %v2886_v34 }
 0x1cb   :  { %1976 = vmatprep.subr.bf16.mxu0 %v2891_v36 }
 0x1ce   :  { %1977 = vmatpush1.bf16.msra.mxu0 %v2889_v37 }
 0x1cf   :  { %1978 = vmatprep.subr.bf16.mxu0 %v2894_v38 }
 0x1d2   :  { %1979 = vmatpush1.bf16.msra.mxu0 %v2892_v39 }
 0x1d3   :  { %1980 = vmatprep.subr.bf16.mxu0 %v2897_v40 }
 0x1d6   :  { %1981 = vmatpush1.bf16.msra.mxu0 %v2895_v41 }
 0x1d7   :  { %1982 = vmatprep.subr.bf16.mxu0 %v2900_v42 }
 0x1da   :  { %1983 = vmatpush1.bf16.msra.mxu0 %v2898_v43 }
 0x1db   :  { %1984 = vmatprep.subr.bf16.mxu0 %v2903_v44 }
 0x1de   :  { %1985 = vmatpush1.bf16.msra.mxu0 %v2901_v45 }
 0x1df   :  { %1986 = vmatprep.subr.bf16.mxu0 %v2906_v46 }
 0x1e2   :  { %1987 = vmatpush1.bf16.msra.mxu0 %v2904_v47 }
 0x1e3   :  { %1988 = vmatprep.subr.bf16.mxu0 %v2909_v48 }
 0x1e6   :  { %1989 = vmatpush1.bf16.msra.mxu0 %v2907_v49 }
 0x21f   :  { %v1506_v58 = vpop.f32.mrb[4].mxu1 }
 0x220   :  { %v2495_v59 = vadd.f32 %v1506_v58, %v298_v53  ;;  %v1508_v60 = vpop.f32.mrb[5].mxu1 }
 0x221   :  { %v2496_v61 = vadd.f32 %v1508_v60, %v302_v15  ;;  %v1510_v62 = vpop.f32.mrb[6].mxu1 }
 0x222   :  { %v1515_v63 = vmax.f32 %v2495_v59, 0.0  ;;  %v1511_v0 = vpop.f32.mrb[7].mxu1 }
 0x223   :  { %v1516_v1 = vmax.f32 %v2496_v61, 0.0 }
 0x224   :  { %v1519_v3 = vpack.c.bf16 %v1515_v63, %v1515_v63 }
 0x225   :  { %v1520_v2 = vpack.c.bf16 %v1516_v1, %v1516_v1 }
 0x227   :  { %1990 = vmatprep.mubr.bf16.mxu0 %v1520_v2 }
 0x228   :  { %1991 = vmatmul.mubr.bf16.vlgmr.msra.gmra.mrb[4].mxu0 %v1519_v3 }
 0x2fb   :  { %v1992_v12 = vpop.f32.mrb[4].mxu0 }
 0x2fc   :  { %v2497_v13 = vadd.f32 %v1992_v12, %v1590_v9  ;;  %v1994_v14 = vpop.f32.mrb[5].mxu0 }
 0x2fd   :  { %v2498_v16 = vadd.f32 %v1994_v14, %v1594_v10  ;;  %v1996_v17 = vpop.f32.mrb[6].mxu0 }
 0x2fe   :  { %v1999_v18 = vmax.f32 %v2497_v13, 0.0  ;;  %v1997_v19 = vpop.f32.mrb[7].mxu0 }
 0x2ff   :  { %v2000_v11 = vmax.f32 %v2498_v16, 0.0 }
 0x300   :  { %v2001_v35 = vpack.c.bf16 %v1999_v18, %v1999_v18 }
 0x301   :  { %v2002_v20 = vpack.c.bf16 %v2000_v11, %v2000_v11 }
 0x303   :  { %2170 = vmatprep.mubr.bf16.mxu1 %v2002_v20 }
 0x304   :  { %2171 = vmatmul.mubr.bf16.vlgmr.msra.gmra.mrb[8].mxu1 %v2001_v35 }
 0x3d7   :  { %v2485_v21 = vpop.f32.mrb[8].mxu1 }
 0x3d8   :  { %v2486_v22 = vpop.f32.mrb[9].mxu1 }
 0x3d9   :  { %v2487_v54 = vadd.f32 %v2486_v22, %v2485_v21  ;;  %v2488_v57 = vpop.f32.mrb[10].mxu1 }
 0x3da   :  { %v2489_v23 = vpop.f32.mrb[11].mxu1 }
 0x3db   :  { %v2173_v24 = vadd.f32 %v2487_v54, %v2452_v55 }
 0x3dd   :  { %2178 = vst [vmem:[#allocation10] sm:$0xff] %v2173_v24 }
 0x3de   :  { %3025 = shalt.err (!%p3022_p8)
}
 0x3df   :  { %s3026_s6 = scalar_lea.hbm %s3215_s7, 128 }
 0x3e0   :  { %p3027_p9 = scmp.ne.s32.totalorder %s3215_s7, %s3026_s6  ;;  %p3030_p10 = scmp.lt.u32.totalorder %s3026_s6, %s3215_s7 }
 0x3e2   :  { %p3032_p11 = pnand %p3030_p10, %p3027_p9 }
 0x3e4   :  { %3035 = shalt.err (!%p3032_p11)
}
 0x3e5   :  { %2188 = dma.vmem_to_hbm [thread:$0]  %s2186_s9, 128, %s3215_s7, [#allocation4]  }
 0x3e6   :  { %3042 = dma.done.wait [#allocation4], 128  }
 0x3e7   :  { %3043 = vsyncadd [#allocation4], 4294967168 }
 0x3e8   :  { %2192 = vsyncpa [#allocation3], 1 }
 0x3e9   :  { %2193 = vsyncpa [#allocation6], 1 }
 0x3ea   :  { %2194 = vsyncpa [#allocation9], 1 }
 0x3eb   :  { %2195 = vsyncpa [#allocation4], 1 }

</bundles_post_ra>
